<compile_context>
chip_gen: v6e
topology: v6e:2x2x1
jax: 0.10.0
libtpu: 0.0.40
codegen_flags: <defaults>
</compile_context>

<pallas_src>
import functools

import jax
import jax.numpy as jnp
from jax.experimental import pallas as pl
from jax.experimental.pallas import tpu as pltpu


def _round_up(x, m):
    return ((x + m - 1) // m) * m


def _largest_tile(dim, target, align):
    """Largest divisor of `dim` that is <= target and a multiple of `align`;
    falls back to the full dimension (always a legal block)."""
    if dim <= target:
        return dim
    t = (target // align) * align
    while t >= align:
        if dim % t == 0:
            return t
        t -= align
    return dim


def _chip_defaults():
    """Ridge-point-aware tile targets and VMEM limits per TPU generation."""
    kind = ""
    try:
        kind = jax.devices()[0].device_kind.lower()
    except Exception:
        pass
    if "v7" in kind:
        # 64 MiB VMEM/TC, ~310 flop/byte ridge -> moderate tiles, headroom left
        # for compiler-internal scratch (never claim the full 64 MiB).
        return {"tile_t": 512, "tile_i": 256, "vmem": 56 * 1024 * 1024}
    if "v6" in kind:
        # 128 MiB VMEM, ~650 flop/byte ridge -> big token tiles.
        return {"tile_t": 768, "tile_i": 512, "vmem": 100 * 1024 * 1024}
    if "v5e" in kind or "v5 lite" in kind or "v5lite" in kind:
        # 128 MiB VMEM, lowest HBM BW, ~240 flop/byte ridge -> big tile_i to
        # halve accumulator RMW traffic and per-step overhead.
        return {"tile_t": 256, "tile_i": 1024, "vmem": 96 * 1024 * 1024}
    # Unknown chip: conservative defaults, compiler-default VMEM limit.
    return {"tile_t": 256, "tile_i": 512, "vmem": None}


def prepare_expert_weights(gate_up_proj, down_proj, *, tile_i=None,
                           compute_dtype=jnp.bfloat16):
    """One-time weight relayout + cast. Call once at weight-load time.

    Returns (gate_w, up_w, down_w):
      gate_w, up_w : (E, n_i, H, tile_i)  block-major; each (H, tile_i) tile is
                     a contiguous HBM slab (matches the kernel's BlockSpec).
      down_w       : (E, I, H)            (row tiles are already contiguous).
    """
    num_experts, hidden_size, two_i = gate_up_proj.shape
    intermediate_size = two_i // 2
    assert down_proj.shape == (num_experts, intermediate_size, hidden_size)

    if tile_i is None:
        tile_i = _largest_tile(intermediate_size, _chip_defaults()["tile_i"], 128)
    assert intermediate_size % tile_i == 0
    n_i = intermediate_size // tile_i

    gu = gate_up_proj.astype(compute_dtype)
    gate_w = gu[:, :, :intermediate_size].reshape(
        num_experts, hidden_size, n_i, tile_i).transpose(0, 2, 1, 3)
    up_w = gu[:, :, intermediate_size:].reshape(
        num_experts, hidden_size, n_i, tile_i).transpose(0, 2, 1, 3)
    down_w = down_proj.astype(compute_dtype)
    return gate_w, up_w, down_w


def _experts_kernel(x_ref, gate_w_ref, up_w_ref, down_w_ref, o_ref, acc_ref):
    # x_ref     : (1, tile_t, H)     bf16   tokens for this (expert, token-tile)
    # gate_w_ref: (1, 1, H, tile_i)  bf16   contiguous gate-weight tile
    # up_w_ref  : (1, 1, H, tile_i)  bf16   contiguous up-weight tile
    # down_w_ref: (1, tile_i, H)     bf16   matching rows of down_proj
    # o_ref     : (1, tile_t, H)     output block, resident across the i axis
    # acc_ref   : (tile_t, H) f32    persistent accumulator scratch
    i_tile = pl.program_id(2)

    @pl.when(i_tile == 0)
    def _init():
        acc_ref[...] = jnp.zeros_like(acc_ref)

    x = x_ref[0]                                                        # (T, H)

    # Two independent MXU matmuls with f32 accumulation (no (T, 2I)
    # intermediate, no lane-axis slicing).
    gate = jnp.dot(x, gate_w_ref[0, 0], preferred_element_type=jnp.float32)
    up = jnp.dot(x, up_w_ref[0, 0], preferred_element_type=jnp.float32)

    # SiLU gating in f32 (VPU + EUP).
    gated = up * (gate * jax.nn.sigmoid(gate))

    # Partial down-projection for this intermediate tile, accumulated in f32.
    acc_ref[...] += jnp.dot(gated.astype(down_w_ref.dtype), down_w_ref[0],
                            preferred_element_type=jnp.float32)

    @pl.when(i_tile == pl.num_programs(2) - 1)
    def _write():
        o_ref[0] = acc_ref[...].astype(o_ref.dtype)


def _build_and_call(x, gate_w, up_w, down_w, *, tile_t, out_dtype,
                    vmem_limit, single_buffer_io):
    num_experts, tokens, hidden_size = x.shape
    _, n_i, _, tile_i = gate_w.shape
    intermediate_size = n_i * tile_i
    n_t = tokens // tile_t

    # x / output block indices are constant across the inner i axis, so double
    # buffering them is wasted VMEM; request a single buffer when supported.
    io_mode = {"pipeline_mode": pl.Buffered(1)} if single_buffer_io else {}

    in_specs = [
        # Tokens for this (expert, token tile); reused across all i tiles.
        pl.BlockSpec((1, tile_t, hidden_size), lambda e, t, i: (e, t, 0),
                     **io_mode),
        # Contiguous (H, tile_i) gate-weight tile.
        pl.BlockSpec((1, 1, hidden_size, tile_i), lambda e, t, i: (e, i, 0, 0)),
        # Contiguous (H, tile_i) up-weight tile.
        pl.BlockSpec((1, 1, hidden_size, tile_i), lambda e, t, i: (e, i, 0, 0)),
        # Matching (tile_i, H) rows of down_proj.
        pl.BlockSpec((1, tile_i, hidden_size), lambda e, t, i: (e, i, 0)),
    ]
    out_specs = pl.BlockSpec((1, tile_t, hidden_size), lambda e, t, i: (e, t, 0),
                             **io_mode)

    def _nbytes(a):
        return int(a.size) * int(a.dtype.itemsize)

    weight_bytes = _nbytes(gate_w) + _nbytes(up_w) + _nbytes(down_w)
    bytes_accessed = (_nbytes(x)
                      # weights are re-streamed once per token tile
                      + n_t * weight_bytes
                      + num_experts * tokens * hidden_size
                      * int(jnp.dtype(out_dtype).itemsize))
    cost = pl.CostEstimate(
        flops=6 * num_experts * tokens * hidden_size * intermediate_size,
        transcendentals=num_experts * tokens * intermediate_size,
        bytes_accessed=bytes_accessed)

    return pl.pallas_call(
        _experts_kernel,
        out_shape=jax.ShapeDtypeStruct(
            (num_experts, tokens, hidden_size), out_dtype),
        grid=(num_experts, n_t, n_i),
        in_specs=in_specs,
        out_specs=out_specs,
        scratch_shapes=[pltpu.VMEM((tile_t, hidden_size), jnp.float32)],
        compiler_params=pltpu.CompilerParams(
            dimension_semantics=("parallel", "parallel", "arbitrary"),
            vmem_limit_bytes=vmem_limit),
        cost_estimate=cost,
    )(x, gate_w, up_w, down_w)


def llama4_text_experts(hidden_states, gate_up_proj=None, down_proj=None, *,
                        prepared_weights=None, tile_t=None, tile_i=None,
                        compute_dtype=jnp.bfloat16, out_dtype=None):
    """Forward pass of Llama4TextExperts. hidden_states: (E*T, H) -> (E*T, H).

    For production use, call prepare_expert_weights(...) once at weight-load
    time and pass prepared_weights=...; passing raw gate_up_proj / down_proj
    re-lays-out and re-casts the weights on every call (an extra HBM pass).
    Output dtype defaults to the compute dtype (bf16): accumulation is already
    f32 in VMEM, so callers wanting f32 can cast outside the kernel.
    """
    defaults = _chip_defaults()

    if prepared_weights is None:
        prepared_weights = prepare_expert_weights(
            gate_up_proj, down_proj, tile_i=tile_i, compute_dtype=compute_dtype)
    gate_w, up_w, down_w = prepared_weights
    num_experts, n_i, hidden_size, tile_i = gate_w.shape

    total_tokens, h = hidden_states.shape
    assert h == hidden_size
    assert total_tokens % num_experts == 0
    tokens = total_tokens // num_experts

    x = hidden_states.reshape(
        num_experts, tokens, hidden_size).astype(compute_dtype)

    # Ridge-point-aware token tile, aligned to >= 16 rows (bf16 sublane pack);
    # pad the token axis rather than falling back to an untiled block.
    if tile_t is None:
        tile_t = min(defaults["tile_t"], _round_up(tokens, 16))
    tile_t = max(8, _round_up(int(tile_t), 8))
    tokens_pad = _round_up(tokens, tile_t)
    if tokens_pad != tokens:
        x = jnp.pad(x, ((0, 0), (0, tokens_pad - tokens), (0, 0)))

    if out_dtype is None:
        out_dtype = compute_dtype

    call = functools.partial(
        _build_and_call, x, gate_w, up_w, down_w,
        tile_t=tile_t, out_dtype=out_dtype, vmem_limit=defaults["vmem"])
    try:
        out = call(single_buffer_io=True)
    except Exception:
        # pl.Buffered / pipeline_mode not supported on this jax version:
        # fall back to default double buffering (costs a bit of VMEM only).
        out = call(single_buffer_io=False)

    if tokens_pad != tokens:
        out = out[:, :tokens, :]
    return out.reshape(-1, hidden_size)
    # TODO(synk): real MoE routing (uneven tokens per expert) needs group
    # offsets via PrefetchScalarGridSpec and empty-expert skipping.


def _reference(hidden_states, gate_up_proj, down_proj,
               compute_dtype=jnp.bfloat16):
    """Pure-JAX reference using the same bf16-in / f32-accumulate numerics."""
    num_experts, hidden_size, two_i = gate_up_proj.shape
    intermediate = two_i // 2
    x = hidden_states.reshape(num_experts, -1, hidden_size).astype(compute_dtype)
    gu = gate_up_proj.astype(compute_dtype)
    dn = down_proj.astype(compute_dtype)
    gate_up = jnp.einsum("eth,ehf->etf", x, gu,
                         preferred_element_type=jnp.float32)
    gate, up = gate_up[..., :intermediate], gate_up[..., intermediate:]
    gated = up * (gate * jax.nn.sigmoid(gate))
    out = jnp.einsum("eti,eih->eth", gated.astype(compute_dtype), dn,
                     preferred_element_type=jnp.float32)
    return out.reshape(-1, hidden_size)


if __name__ == "__main__":
    # Small config: num_local_experts=2, hidden_size=64, intermediate_size=256,
    # 24 tokens per expert (deliberately not a multiple of the 16-row token
    # tile so the padding path is exercised). Tiles forced small (tile_t=16,
    # tile_i=128) so the grid exercises the parallel token-tile axis and the
    # intermediate reduction / accumulator path.
    num_experts = 2
    hidden_size = 64
    intermediate_size = 256
    tokens_per_expert = 24

    key = jax.random.PRNGKey(0)
    k_x, k_gu, k_dn = jax.random.split(key, 3)

    hidden_states = jax.random.normal(
        k_x, (num_experts * tokens_per_expert, hidden_size), dtype=jnp.float32)
    gate_up_proj = jax.random.normal(
        k_gu, (num_experts, hidden_size, 2 * intermediate_size),
        dtype=jnp.float32)
    down_proj = jax.random.normal(
        k_dn, (num_experts, intermediate_size, hidden_size), dtype=jnp.float32)

    # One-time weight relayout / bf16 cast (done once, outside the forward).
    prepped = prepare_expert_weights(gate_up_proj, down_proj, tile_i=128)

    out = llama4_text_experts(hidden_states, prepared_weights=prepped, tile_t=16)
    out = jax.block_until_ready(out)

    ref = _reference(hidden_states, gate_up_proj, down_proj)
    assert out.shape == (num_experts * tokens_per_expert, hidden_size)
    out_f32 = out.astype(jnp.float32)
    assert jnp.allclose(out_f32, ref, rtol=2e-2, atol=1e-1), (
        float(jnp.max(jnp.abs(out_f32 - ref))))

    print("KERNEL_OK")
</pallas_src>

<mosaic_0001>
module attributes {stable_mosaic.version = 11 : i64} {
  func.func @_experts_kernel(%arg0: i32, %arg1: i32, %arg2: i32, %arg3: memref<1x16x64xbf16, #tpu.memory_space<vmem>>, %arg4: memref<1x1x64x128xbf16, #tpu.memory_space<vmem>>, %arg5: memref<1x1x64x128xbf16, #tpu.memory_space<vmem>>, %arg6: memref<1x128x64xbf16, #tpu.memory_space<vmem>>, %arg7: memref<1x16x64xbf16, #tpu.memory_space<vmem>>, %arg8: memref<16x64xf32, #tpu.memory_space<vmem>>) attributes {dimension_semantics = [#tpu.dimension_semantics<parallel>, #tpu.dimension_semantics<parallel>, #tpu.dimension_semantics<arbitrary>], iteration_bounds = array<i64: 2, 2, 2>, scalar_prefetch = 0 : i64, scratch_operands = 1 : i64, tpu.core_type = #tpu.core_type<tc>, window_params = [{pipeline_mode = #tpu.pipeline_mode<synchronous>, transform_indices = @transform_0, window_bounds = array<i64: 1, 16, 64>}, {transform_indices = @transform_1, window_bounds = array<i64: 1, 1, 64, 128>}, {transform_indices = @transform_2, window_bounds = array<i64: 1, 1, 64, 128>}, {transform_indices = @transform_3, window_bounds = array<i64: 1, 128, 64>}, {pipeline_mode = #tpu.pipeline_mode<synchronous>, transform_indices = @transform_4, window_bounds = array<i64: 1, 16, 64>}]} {
    %c0_i32 = arith.constant 0 : i32
    %0 = arith.cmpi eq, %arg2, %c0_i32 : i32
    %1 = arith.extui %0 : i1 to i32
    %c0_i32_0 = arith.constant 0 : i32
    %2 = arith.cmpi ne, %1, %c0_i32_0 : i32
    scf.if %2 {
      %cst_22 = arith.constant 0.000000e+00 : f32
      %28 = vector.broadcast %cst_22 : f32 to vector<16x64xf32>
      %c0_23 = arith.constant 0 : index
      %c0_24 = arith.constant 0 : index
      %29 = vector.load %arg8[%c0_23, %c0_24] : memref<16x64xf32, #tpu.memory_space<vmem>>, vector<16x64xf32>
      tpu.vector_store %arg8[%c0_23, %c0_24], %28 {strides = array<i32>} : memref<16x64xf32, #tpu.memory_space<vmem>>, vector<16x64xf32>,
    } else {
    }
    %c0 = arith.constant 0 : index
    %c0_1 = arith.constant 0 : index
    %c0_2 = arith.constant 0 : index
    %3 = vector.load %arg3[%c0, %c0_1, %c0_2] : memref<1x16x64xbf16, #tpu.memory_space<vmem>>, vector<1x16x64xbf16>
    %4 = vector.shape_cast %3 : vector<1x16x64xbf16> to vector<16x64xbf16>
    %c0_3 = arith.constant 0 : index
    %c0_4 = arith.constant 0 : index
    %c0_5 = arith.constant 0 : index
    %c0_6 = arith.constant 0 : index
    %5 = vector.load %arg4[%c0_3, %c0_4, %c0_5, %c0_6] : memref<1x1x64x128xbf16, #tpu.memory_space<vmem>>, vector<1x1x64x128xbf16>
    %6 = vector.shape_cast %5 : vector<1x1x64x128xbf16> to vector<64x128xbf16>
    %cst = arith.constant dense<0.000000e+00> : vector<16x128xf32>
    %7 = tpu.matmul %4, %6, %cst {dimension_numbers = #tpu.dot_dimension_numbers<[1], [0], [0], [1], [0, 0, 1, 1], [], []>} : vector<16x64xbf16>, vector<64x128xbf16>, vector<16x128xf32> -> vector<16x128xf32>
    %c0_7 = arith.constant 0 : index
    %c0_8 = arith.constant 0 : index
    %c0_9 = arith.constant 0 : index
    %c0_10 = arith.constant 0 : index
    %8 = vector.load %arg5[%c0_7, %c0_8, %c0_9, %c0_10] : memref<1x1x64x128xbf16, #tpu.memory_space<vmem>>, vector<1x1x64x128xbf16>
    %9 = vector.shape_cast %8 : vector<1x1x64x128xbf16> to vector<64x128xbf16>
    %cst_11 = arith.constant dense<0.000000e+00> : vector<16x128xf32>
    %10 = tpu.matmul %4, %9, %cst_11 {dimension_numbers = #tpu.dot_dimension_numbers<[1], [0], [0], [1], [0, 0, 1, 1], [], []>} : vector<16x64xbf16>, vector<64x128xbf16>, vector<16x128xf32> -> vector<16x128xf32>
    %11 = arith.negf %7 : vector<16x128xf32>
    %12 = math.exp %11 : vector<16x128xf32>
    %cst_12 = arith.constant 1.000000e+00 : f32
    %13 = vector.broadcast %cst_12 : f32 to vector<16x128xf32>
    %14 = arith.addf %13, %12 : vector<16x128xf32>
    %15 = arith.divf %13, %14 : vector<16x128xf32>
    %16 = arith.mulf %7, %15 : vector<16x128xf32>
    %17 = arith.mulf %10, %16 : vector<16x128xf32>
    %c0_13 = arith.constant 0 : index
    %c0_14 = arith.constant 0 : index
    %18 = vector.load %arg8[%c0_13, %c0_14] : memref<16x64xf32, #tpu.memory_space<vmem>>, vector<16x64xf32>
    %19 = arith.truncf %17 : vector<16x128xf32> to vector<16x128xbf16>
    %c0_15 = arith.constant 0 : index
    %c0_16 = arith.constant 0 : index
    %c0_17 = arith.constant 0 : index
    %20 = vector.load %arg6[%c0_15, %c0_16, %c0_17] : memref<1x128x64xbf16, #tpu.memory_space<vmem>>, vector<1x128x64xbf16>
    %21 = vector.shape_cast %20 : vector<1x128x64xbf16> to vector<128x64xbf16>
    %cst_18 = arith.constant dense<0.000000e+00> : vector<16x64xf32>
    %22 = tpu.matmul %19, %21, %cst_18 {dimension_numbers = #tpu.dot_dimension_numbers<[1], [0], [0], [1], [0, 0, 1, 1], [], []>} : vector<16x128xbf16>, vector<128x64xbf16>, vector<16x64xf32> -> vector<16x64xf32>
    %23 = arith.addf %18, %22 : vector<16x64xf32>
    %c0_19 = arith.constant 0 : index
    %c0_20 = arith.constant 0 : index
    %24 = vector.load %arg8[%c0_19, %c0_20] : memref<16x64xf32, #tpu.memory_space<vmem>>, vector<16x64xf32>
    tpu.vector_store %arg8[%c0_19, %c0_20], %23 {strides = array<i32>} : memref<16x64xf32, #tpu.memory_space<vmem>>, vector<16x64xf32>,
    %c1_i32 = arith.constant 1 : i32
    %25 = arith.cmpi eq, %arg2, %c1_i32 : i32
    %26 = arith.extui %25 : i1 to i32
    %c0_i32_21 = arith.constant 0 : i32
    %27 = arith.cmpi ne, %26, %c0_i32_21 : i32
    scf.if %27 {
      %c0_22 = arith.constant 0 : index
      %c0_23 = arith.constant 0 : index
      %28 = vector.load %arg8[%c0_22, %c0_23] : memref<16x64xf32, #tpu.memory_space<vmem>>, vector<16x64xf32>
      %29 = arith.truncf %28 : vector<16x64xf32> to vector<16x64xbf16>
      %c0_24 = arith.constant 0 : index
      %c0_25 = arith.constant 0 : index
      %c0_26 = arith.constant 0 : index
      %30 = vector.load %arg7[%c0_24, %c0_25, %c0_26] : memref<1x16x64xbf16, #tpu.memory_space<vmem>>, vector<1x16x64xbf16>
      %31 = vector.shape_cast %30 : vector<1x16x64xbf16> to vector<16x64xbf16>
      %32 = vector.shape_cast %29 : vector<16x64xbf16> to vector<1x16x64xbf16>
      tpu.vector_store %arg7[%c0_24, %c0_25, %c0_26], %32 {strides = array<i32>} : memref<1x16x64xbf16, #tpu.memory_space<vmem>>, vector<1x16x64xbf16>,
    } else {
    }
    return
  }
  func.func @transform_0(%arg0: i32, %arg1: i32, %arg2: i32) -> (i32, i32, i32) {
    %c0_i32 = arith.constant 0 : i32
    %c0_i32_0 = arith.constant 0 : i32
    return %arg0, %arg1, %c0_i32 : i32, i32, i32
  }
  func.func @transform_1(%arg0: i32, %arg1: i32, %arg2: i32) -> (i32, i32, i32, i32) {
    %c0_i32 = arith.constant 0 : i32
    %c0_i32_0 = arith.constant 0 : i32
    %c0_i32_1 = arith.constant 0 : i32
    return %arg0, %arg2, %c0_i32, %c0_i32_0 : i32, i32, i32, i32
  }
  func.func @transform_2(%arg0: i32, %arg1: i32, %arg2: i32) -> (i32, i32, i32, i32) {
    %c0_i32 = arith.constant 0 : i32
    %c0_i32_0 = arith.constant 0 : i32
    %c0_i32_1 = arith.constant 0 : i32
    return %arg0, %arg2, %c0_i32, %c0_i32_0 : i32, i32, i32, i32
  }
  func.func @transform_3(%arg0: i32, %arg1: i32, %arg2: i32) -> (i32, i32, i32) {
    %c0_i32 = arith.constant 0 : i32
    %c0_i32_0 = arith.constant 0 : i32
    return %arg0, %arg2, %c0_i32 : i32, i32, i32
  }
  func.func @transform_4(%arg0: i32, %arg1: i32, %arg2: i32) -> (i32, i32, i32) {
    %c0_i32 = arith.constant 0 : i32
    %c0_i32_0 = arith.constant 0 : i32
    return %arg0, %arg1, %c0_i32 : i32, i32, i32
  }
}

module attributes {stable_mosaic.version = 11 : i64} {
  func.func @_experts_kernel(%arg0: i32, %arg1: i32, %arg2: i32, %arg3: memref<1x16x64xbf16, #tpu.memory_space<vmem>>, %arg4: memref<1x1x64x128xbf16, #tpu.memory_space<vmem>>, %arg5: memref<1x1x64x128xbf16, #tpu.memory_space<vmem>>, %arg6: memref<1x128x64xbf16, #tpu.memory_space<vmem>>, %arg7: memref<1x16x64xbf16, #tpu.memory_space<vmem>>, %arg8: memref<16x64xf32, #tpu.memory_space<vmem>>) attributes {dimension_semantics = [#tpu.dimension_semantics<parallel>, #tpu.dimension_semantics<parallel>, #tpu.dimension_semantics<arbitrary>], iteration_bounds = array<i64: 2, 2, 2>, scalar_prefetch = 0 : i64, scratch_operands = 1 : i64, tpu.core_type = #tpu.core_type<tc>, window_params = [{transform_indices = @transform_0, window_bounds = array<i64: 1, 16, 64>}, {transform_indices = @transform_1, window_bounds = array<i64: 1, 1, 64, 128>}, {transform_indices = @transform_2, window_bounds = array<i64: 1, 1, 64, 128>}, {transform_indices = @transform_3, window_bounds = array<i64: 1, 128, 64>}, {transform_indices = @transform_4, window_bounds = array<i64: 1, 16, 64>}]} {
    %c0_i32 = arith.constant 0 : i32
    %0 = arith.cmpi eq, %arg2, %c0_i32 : i32
    %1 = arith.extui %0 : i1 to i32
    %c0_i32_0 = arith.constant 0 : i32
    %2 = arith.cmpi ne, %1, %c0_i32_0 : i32
    scf.if %2 {
      %cst_22 = arith.constant 0.000000e+00 : f32
      %28 = vector.broadcast %cst_22 : f32 to vector<16x64xf32>
      %c0_23 = arith.constant 0 : index
      %c0_24 = arith.constant 0 : index
      %29 = vector.load %arg8[%c0_23, %c0_24] : memref<16x64xf32, #tpu.memory_space<vmem>>, vector<16x64xf32>
      tpu.vector_store %arg8[%c0_23, %c0_24], %28 {strides = array<i32>} : memref<16x64xf32, #tpu.memory_space<vmem>>, vector<16x64xf32>,
    } else {
    }
    %c0 = arith.constant 0 : index
    %c0_1 = arith.constant 0 : index
    %c0_2 = arith.constant 0 : index
    %3 = vector.load %arg3[%c0, %c0_1, %c0_2] : memref<1x16x64xbf16, #tpu.memory_space<vmem>>, vector<1x16x64xbf16>
    %4 = vector.shape_cast %3 : vector<1x16x64xbf16> to vector<16x64xbf16>
    %c0_3 = arith.constant 0 : index
    %c0_4 = arith.constant 0 : index
    %c0_5 = arith.constant 0 : index
    %c0_6 = arith.constant 0 : index
    %5 = vector.load %arg4[%c0_3, %c0_4, %c0_5, %c0_6] : memref<1x1x64x128xbf16, #tpu.memory_space<vmem>>, vector<1x1x64x128xbf16>
    %6 = vector.shape_cast %5 : vector<1x1x64x128xbf16> to vector<64x128xbf16>
    %cst = arith.constant dense<0.000000e+00> : vector<16x128xf32>
    %7 = tpu.matmul %4, %6, %cst {dimension_numbers = #tpu.dot_dimension_numbers<[1], [0], [0], [1], [0, 0, 1, 1], [], []>} : vector<16x64xbf16>, vector<64x128xbf16>, vector<16x128xf32> -> vector<16x128xf32>
    %c0_7 = arith.constant 0 : index
    %c0_8 = arith.constant 0 : index
    %c0_9 = arith.constant 0 : index
    %c0_10 = arith.constant 0 : index
    %8 = vector.load %arg5[%c0_7, %c0_8, %c0_9, %c0_10] : memref<1x1x64x128xbf16, #tpu.memory_space<vmem>>, vector<1x1x64x128xbf16>
    %9 = vector.shape_cast %8 : vector<1x1x64x128xbf16> to vector<64x128xbf16>
    %cst_11 = arith.constant dense<0.000000e+00> : vector<16x128xf32>
    %10 = tpu.matmul %4, %9, %cst_11 {dimension_numbers = #tpu.dot_dimension_numbers<[1], [0], [0], [1], [0, 0, 1, 1], [], []>} : vector<16x64xbf16>, vector<64x128xbf16>, vector<16x128xf32> -> vector<16x128xf32>
    %11 = arith.negf %7 : vector<16x128xf32>
    %12 = math.exp %11 : vector<16x128xf32>
    %cst_12 = arith.constant 1.000000e+00 : f32
    %13 = vector.broadcast %cst_12 : f32 to vector<16x128xf32>
    %14 = arith.addf %13, %12 : vector<16x128xf32>
    %15 = arith.divf %13, %14 : vector<16x128xf32>
    %16 = arith.mulf %7, %15 : vector<16x128xf32>
    %17 = arith.mulf %10, %16 : vector<16x128xf32>
    %c0_13 = arith.constant 0 : index
    %c0_14 = arith.constant 0 : index
    %18 = vector.load %arg8[%c0_13, %c0_14] : memref<16x64xf32, #tpu.memory_space<vmem>>, vector<16x64xf32>
    %19 = arith.truncf %17 : vector<16x128xf32> to vector<16x128xbf16>
    %c0_15 = arith.constant 0 : index
    %c0_16 = arith.constant 0 : index
    %c0_17 = arith.constant 0 : index
    %20 = vector.load %arg6[%c0_15, %c0_16, %c0_17] : memref<1x128x64xbf16, #tpu.memory_space<vmem>>, vector<1x128x64xbf16>
    %21 = vector.shape_cast %20 : vector<1x128x64xbf16> to vector<128x64xbf16>
    %cst_18 = arith.constant dense<0.000000e+00> : vector<16x64xf32>
    %22 = tpu.matmul %19, %21, %cst_18 {dimension_numbers = #tpu.dot_dimension_numbers<[1], [0], [0], [1], [0, 0, 1, 1], [], []>} : vector<16x128xbf16>, vector<128x64xbf16>, vector<16x64xf32> -> vector<16x64xf32>
    %23 = arith.addf %18, %22 : vector<16x64xf32>
    %c0_19 = arith.constant 0 : index
    %c0_20 = arith.constant 0 : index
    %24 = vector.load %arg8[%c0_19, %c0_20] : memref<16x64xf32, #tpu.memory_space<vmem>>, vector<16x64xf32>
    tpu.vector_store %arg8[%c0_19, %c0_20], %23 {strides = array<i32>} : memref<16x64xf32, #tpu.memory_space<vmem>>, vector<16x64xf32>,
    %c1_i32 = arith.constant 1 : i32
    %25 = arith.cmpi eq, %arg2, %c1_i32 : i32
    %26 = arith.extui %25 : i1 to i32
    %c0_i32_21 = arith.constant 0 : i32
    %27 = arith.cmpi ne, %26, %c0_i32_21 : i32
    scf.if %27 {
      %c0_22 = arith.constant 0 : index
      %c0_23 = arith.constant 0 : index
      %28 = vector.load %arg8[%c0_22, %c0_23] : memref<16x64xf32, #tpu.memory_space<vmem>>, vector<16x64xf32>
      %29 = arith.truncf %28 : vector<16x64xf32> to vector<16x64xbf16>
      %c0_24 = arith.constant 0 : index
      %c0_25 = arith.constant 0 : index
      %c0_26 = arith.constant 0 : index
      %30 = vector.load %arg7[%c0_24, %c0_25, %c0_26] : memref<1x16x64xbf16, #tpu.memory_space<vmem>>, vector<1x16x64xbf16>
      %31 = vector.shape_cast %30 : vector<1x16x64xbf16> to vector<16x64xbf16>
      %32 = vector.shape_cast %29 : vector<16x64xbf16> to vector<1x16x64xbf16>
      tpu.vector_store %arg7[%c0_24, %c0_25, %c0_26], %32 {strides = array<i32>} : memref<1x16x64xbf16, #tpu.memory_space<vmem>>, vector<1x16x64xbf16>,
    } else {
    }
    return
  }
  func.func @transform_0(%arg0: i32, %arg1: i32, %arg2: i32) -> (i32, i32, i32) {
    %c0_i32 = arith.constant 0 : i32
    %c0_i32_0 = arith.constant 0 : i32
    return %arg0, %arg1, %c0_i32 : i32, i32, i32
  }
  func.func @transform_1(%arg0: i32, %arg1: i32, %arg2: i32) -> (i32, i32, i32, i32) {
    %c0_i32 = arith.constant 0 : i32
    %c0_i32_0 = arith.constant 0 : i32
    %c0_i32_1 = arith.constant 0 : i32
    return %arg0, %arg2, %c0_i32, %c0_i32_0 : i32, i32, i32, i32
  }
  func.func @transform_2(%arg0: i32, %arg1: i32, %arg2: i32) -> (i32, i32, i32, i32) {
    %c0_i32 = arith.constant 0 : i32
    %c0_i32_0 = arith.constant 0 : i32
    %c0_i32_1 = arith.constant 0 : i32
    return %arg0, %arg2, %c0_i32, %c0_i32_0 : i32, i32, i32, i32
  }
  func.func @transform_3(%arg0: i32, %arg1: i32, %arg2: i32) -> (i32, i32, i32) {
    %c0_i32 = arith.constant 0 : i32
    %c0_i32_0 = arith.constant 0 : i32
    return %arg0, %arg2, %c0_i32 : i32, i32, i32
  }
  func.func @transform_4(%arg0: i32, %arg1: i32, %arg2: i32) -> (i32, i32, i32) {
    %c0_i32 = arith.constant 0 : i32
    %c0_i32_0 = arith.constant 0 : i32
    return %arg0, %arg1, %c0_i32 : i32, i32, i32
  }
}

</mosaic_0001>

<bundles_post_ra>
// kernel: tpu_custom_call.1
= control target key start
LH: loop header
LB: loop body
LE: loop exit
PB: predicated region body
PF: predicated region fallthrough
CT: control target
= control target key end

     0   :  { %9 = vsyncpa [#allocation4], 0  ;;  %s1135_s15 = smov 0   ;;  %s1137_s16 = smov 0   ;;  %s1303_s0 = inlined_call_operand.vmem [shape: bf16[2,32,64], index: 0, kind: input, shape index: {}]   ;;  %s1304_s1 = inlined_call_operand.vmem [shape: bf16[2,2,64,128], index: 1, kind: input, shape index: {}]   ;;  %s1305_s2 = inlined_call_operand.vmem [shape: bf16[2,2,64,128], index: 2, kind: input, shape index: {}]   ;;  %s1306_s3 = inlined_call_operand.vmem [shape: bf16[2,256,64], index: 3, kind: input, shape index: {}]   ;;  %s1307_s4 = inlined_call_operand.hbm [shape: bf16[2,32,64], index: 4, kind: output, shape index: {}]  }
   0x1   :  { %s1139_s17 = smov 0   ;;  %s1141_s18 = smov 0  }
   0x2   :  { %s1143_s19 = smov 0   ;;  %s1145_s20 = smov 0  }
   0x3   :  { %s1147_s21 = smov 0   ;;  %s1149_s22 = smov 0  }
   0x4   :  { %s1151_s23 = smov 0  }
   0x5 LB: > { %1313 = sst [smem:[#allocation6_spill]] %s1090_s20  ;;  %s27_s24 = sadd.s32 1, %s1090_s20  ;;  %s1102_s23 = sphi %s1151_s23, %s15_s23   ;;  %s1098_s22 = sphi %s1149_s22, %s1327_s22   ;;  %s1094_s21 = sphi %s1147_s21, %s1326_s21   ;;  %s1090_s20 = sphi %s1145_s20, %s1325_s20   ;;  %s1086_s19 = sphi %s1143_s19, %s1324_s19   ;;  %s1082_s18 = sphi %s1141_s18, %s1323_s18   ;;  %s1078_s17 = sphi %s1139_s17, %s1322_s17   ;;  %s1074_s16 = sphi %s1137_s16, %s1329_s16   ;;  %s1070_s15 = sphi %s1135_s15, %s1328_s15  }
   0x6   : > { %1314 = sst [smem:[#allocation7_spill]] %s1094_s21  ;;  %p28_p0 = scmp.ge.s32.totalorder %s27_s24, 2 }
   0x7   : > { %1315 = sst [smem:[#allocation8_spill]] %s1098_s22  ;;  %s30_s25 = sadd.s32 1, %s1094_s21 }
   0x8   : > { %s786_s26 = sadd.s32 4294967295, %s1102_s23   ;;  %s34_s27 = sadd.s32 1, %s1098_s22 }
   0x9   : > { %s1331_s24 = smov (%p28_p0, %s27_s24), 0  ;;  %s1333_s25 = smov (!%p28_p0, %s30_s25), %s1094_s21 }
   0xa   : > { %1316 = sst [smem:[#allocation9_spill]] %s1331_s24  ;;  %p165_p1 = scmp.ne.s32.totalorder %s1074_s16, %s1070_s15 }
   0xb   : > { %p166_p2 = scmp.eq.s32.totalorder %s786_s26, 7  ;;  %p32_p3 = scmp.ge.s32.totalorder %s1333_s25, 2 }
   0xc   : > { %p789_p4 = scmp.ge.s32.totalorder %s1102_s23, 1  ;;  %p240_p6 = scmp.lt.s32.totalorder %s1102_s23, 9 }
   0xd   : > { %p1187_p5 = por %p166_p2, %p165_p1  ;;  %s1335_s25 = smov (%p32_p3, %s1333_s25), 0 }
   0xe   : > { %1318 = sst [smem:[#allocation10_spill]] %s1335_s25  ;;  %s1337_s27 = smov (!%p32_p3, %s34_s27), %s1098_s22 }
   0xf   : > { %p241_p7 = pnand %p789_p4, %p240_p6  ;;  %p36_p8 = scmp.ge.s32.totalorder %s1337_s27, 2 }
  0x10   : > { %s151_s29 = ssub.s32 %s1094_s21, %s1335_s25  ;;  %s155_s6 = sadd.s32 1, %s1074_s16 }
  0x11   : > { %s1339_s27 = smov (%p36_p8, %s1337_s27), 0  ;;  %s1206_s8 = sshll.u32 (!%p241_p7), %s1082_s18, 1 }
  0x12   : > { %1319 = sst [smem:[#allocation11_spill]] %s1339_s27  ;;  %s150_s30 = ssub.s32 %s1098_s22, %s1339_s27 }
  0x13   : > { %s152_s5 = sor.u32 %s151_s29, %s150_s30  ;;  %p293_p10 = scmp.lt.s32.totalorder (!%p241_p7), %s1086_s19, 1 }
  0x14   : > { %p153_p9 = scmp.eq.s32.totalorder %s152_s5, 0  ;;  %244 = sbr.rel (%p241_p7) target bundleno = 527 (0x20f), region = 36 }
  0x15   : > { %p295_p11 = scmp.lt.s32.totalorder (!%p241_p7), %s1206_s8, 3  ;;  %p304_p12 = scmp.lt.s32.totalorder (!%p241_p7), %s1078_s17, 1 }
  0x16   : > { %s1203_s7 = scalar_select %p153_p9, %s1074_s16, %s155_s6  }
  0x17   : > { %s799_s14 = sshll.u32 (!%p241_p7), %s1078_s17, 4  ;;  %p802_p0 = scmp.ne.s32.totalorder (!%p241_p7), %s1078_s17, 0 }
  0x18   : > { %1320 = sst [smem:[#allocation12_spill]] %s1203_s7  ;;  %p323_p13 = scmp.lt.s32.totalorder (!%p241_p7), %s799_s14, 31 }
  0x19   : > { %s294_s9 = scalar_select %p293_p10, %s1086_s19, 1 }
  0x1a   : > { %s296_s10 = scalar_select %p295_p11, %s1206_s8, 3 }
  0x1b   : > { %s791_s11 = sshll.u32 %s294_s9, 2  ;;  %s794_s12 = sshll.u32 %s294_s9, 4 }
  0x1c   : > { %s298_s13 = sadd.s32 %s791_s11, %s296_s10  ;;  %s800_s18 = sshll.u32 %s294_s9, 5 }
  0x1d   : > { %s792_s15 = sshll.u32 %s298_s13, 2  ;;  %s1341_s14 = smov (!%p323_p13, %s799_s14), 31 }
  0x1e   : > { %s1217_s30 = scalar_lea.vmem %s1303_s0, %s792_s15  ;;  %s326_s25 = sadd.s32 %s800_s18, %s1341_s14 }
  0x1f   : > { %s305_s5 = scalar_select %p304_p12, %s1078_s17, 1 }
  0x20   : > { %s801_s22 = sshll.u32 %s326_s25, 2  ;;  %335 = sbr.rel (%p802_p0) target bundleno = 39 (0x27), region = 40 }
  0x21   : > { %s793_s6 = sshll.u32 %s305_s5, 3  ;;  %s1231_s9 = scalar_lea.vmem %s1306_s3, %s801_s22 }
  0x22   : > { %s308_s27 = sadd.s32 %s794_s12, %s793_s6 }
  0x23   : > { %s795_s24 = sshll.u32 %s308_s27, 2 }
  0x24   : > { %s310_s10 = scalar_lea.vmem %s1304_s1, %s795_s24  ;;  %s1226_s7 = scalar_lea.vmem %s1305_s2, %s795_s24 }
  0x25   : > { %vm336_vm0 = vcmask 523264   ;;  %v1104_v0 = vmov 0.0  }
  0x26   : > { %337 = vst.msk [vmem:[#allocation2] sm:$0xff] %vm336_vm0, %v1104_v0  ;;  %338 = vst.msk [vmem:[#allocation2 + $0x8] sm:$0xff] %vm336_vm0, %v1104_v0 }
  0x27 PF: > { %v977_v1 = vld [vmem:[%s310_s10 + $0x18] sm:$0xff]   ;;  %v1105_v2 = vmov 0.0   ;;  %v978_v3 = vld [vmem:[%s310_s10 + $0x10] sm:$0xff]   ;;  %vm1106_vm1 = vmmov 0   ;;  %v979_v4 = vld [vmem:[%s310_s10 + $0x8] sm:$0xff]   ;;  %vm378_vm2 = vcmask 523264  }
  0x28   : > { %853 = vmatprep.subr.bf16.mxu1 %v1105_v2  ;;  %877 = vmatprep.subr.bf16.mxu0 %v1105_v2  ;;  %v980_v5 = vld [vmem:[%s310_s10] sm:$0xff]   ;;  %v982_v7 = vld [vmem:[%s1226_s7 + $0x18] sm:$0xff]   ;;  %v983_v8 = vld [vmem:[%s1226_s7 + $0x10] sm:$0xff]   ;;  %p824_p1 = scmp.ne.s32.totalorder %s1078_s17, 1 }
  0x29   : > { %854 = vmatpush3.bf16.msra.mxu1 %v977_v1  ;;  %861 = vmatprep.mubr.msk.bf16.mxu1 %vm1106_vm1, %v1105_v2  ;;  %v981_v6 = vld [vmem:[%s1217_s30] sm:$0xff]   ;;  %v984_v9 = vld [vmem:[%s1226_s7 + $0x8] sm:$0xff]   ;;  %v986_v11 = vld [vmem:[%s1231_s9 + $0x38] sm:$0xff]  }
  0x2a   : > { %855 = vmatprep.subr.bf16.mxu1 %v1105_v2  ;;  %893 = vmatprep.mubr.msk.bf16.mxu0 %vm1106_vm1, %v1105_v2  ;;  %v985_v10 = vld [vmem:[%s1226_s7] sm:$0xff]   ;;  %v987_v12 = vld [vmem:[%s1231_s9 + $0x30] sm:$0xff]   ;;  %v988_v13 = vld [vmem:[%s1231_s9 + $0x28] sm:$0xff]  }
  0x2b   : > { %878 = vmatpush3.bf16.msra.mxu0 %v986_v11  ;;  %v989_v14 = vld [vmem:[%s1231_s9 + $0x20] sm:$0xff]   ;;  %v990_v15 = vld [vmem:[%s1231_s9 + $0x18] sm:$0xff]   ;;  %v991_v16 = vld [vmem:[%s1231_s9 + $0x10] sm:$0xff]  }
  0x2c   : > { %879 = vmatprep.subr.bf16.mxu0 %v1105_v2  ;;  %v992_v17 = vld [vmem:[%s1231_s9 + $0x8] sm:$0xff]   ;;  %v993_v18 = vld [vmem:[%s1231_s9] sm:$0xff]  }
  0x2d   : > { %856 = vmatpush3.bf16.msra.mxu1 %v978_v3  ;;  %v512_v40 = vld [vmem:[#allocation2] sm:$0xff]  ;;  %v513_v44 = vld [vmem:[#allocation2 + $0x8] sm:$0xff] }
  0x2e   : > { %857 = vmatprep.subr.bf16.mxu1 %v1105_v2 }
  0x2f   : > { %880 = vmatpush3.bf16.msra.mxu0 %v987_v12 }
  0x30   : > { %881 = vmatprep.subr.bf16.mxu0 %v1105_v2 }
  0x31   : > { %858 = vmatpush3.bf16.msra.mxu1 %v979_v4 }
  0x32   : > { %859 = vmatprep.subr.bf16.mxu1 %v1105_v2 }
  0x33   : > { %882 = vmatpush3.bf16.msra.mxu0 %v988_v13 }
  0x34   : > { %883 = vmatprep.subr.bf16.mxu0 %v1105_v2 }
  0x35   : > { %860 = vmatpush3.bf16.msra.mxu1 %v980_v5 }
  0x36   : > { %865 = vmatprep.subr.bf16.mxu1 %v1105_v2 }
  0x37   : > { %884 = vmatpush3.bf16.msra.mxu0 %v989_v14 }
  0x38   : > { %862 = vmatmul.mubr.msk.bf16.vlgmr.msra.gmra.mxu1 %vm378_vm2, %v981_v6  ;;  %885 = vmatprep.subr.bf16.mxu0 %v1105_v2 }
  0x39   : > { %866 = vmatpush3.bf16.msra.mxu1 %v982_v7  ;;  %873 = vmatprep.mubr.msk.bf16.mxu1 %vm1106_vm1, %v1105_v2 }
  0x3a   : > { %867 = vmatprep.subr.bf16.mxu1 %v1105_v2 }
  0x3b   : > { %886 = vmatpush3.bf16.msra.mxu0 %v990_v15 }
  0x3c   : > { %887 = vmatprep.subr.bf16.mxu0 %v1105_v2 }
  0x3d   : > { %868 = vmatpush3.bf16.msra.mxu1 %v983_v8 }
  0x3e   : > { %869 = vmatprep.subr.bf16.mxu1 %v1105_v2 }
  0x3f   : > { %888 = vmatpush3.bf16.msra.mxu0 %v991_v16 }
  0x40   : > { %889 = vmatprep.subr.bf16.mxu0 %v1105_v2 }
  0x41   : > { %870 = vmatpush3.bf16.msra.mxu1 %v984_v9 }
  0x42   : > { %871 = vmatprep.subr.bf16.mxu1 %v1105_v2 }
  0x43   : > { %890 = vmatpush3.bf16.msra.mxu0 %v992_v17 }
  0x44   : > { %891 = vmatprep.subr.bf16.mxu0 %v1105_v2 }
  0x45   : > { %872 = vmatpush3.bf16.msra.mxu1 %v985_v10 }
  0x47   : > { %892 = vmatpush3.bf16.msra.mxu0 %v993_v18 }
  0x48   : > { %874 = vmatmul.mubr.msk.bf16.vlgmr.msra.gmra.mxu1 %vm378_vm2, %v981_v6 }
  0xf8   : > { %v416_v19 = vpop.f32.mrf.mxu1 }
  0xf9   : > { %v814_v20 = vmul.f32 -1.442695, %v416_v19 }
  0xfa   : > { %v863_v21 = vpop.f32.mrf.mxu1 }
  0xfb   : > { %994 = vpow2.f32 %v814_v20 }
  0xfc   : > { %v419_v22 = vpop.f32.mrf.mxu1 }
  0xfd   : > { %v815_v23 = vmul.f32 -1.442695, %v419_v22 }
  0xfe   : > { %v864_v24 = vpop.f32.mrf.mxu1 }
  0xff   : > { %996 = vpow2.f32 %v815_v23 }
 0x108   : > { %v995_v25 = vpop.eup %994  ;;  %v489_v26 = vpop.f32.mrf.mxu1 }
 0x109   : > { %v502_v27 = vadd.f32 1.0, %v995_v25 }
 0x10a   : > { %v875_v28 = vpop.f32.mrf.mxu1 }
 0x10b   : > { %998 = vrcp.f32 %v502_v27 }
 0x10c   : > { %v997_v29 = vpop.eup %996  ;;  %v492_v30 = vpop.f32.mrf.mxu1 }
 0x10d   : > { %v503_v31 = vadd.f32 1.0, %v997_v29 }
 0x10e   : > { %v876_v32 = vpop.f32.mrf.mxu1 }
 0x10f   : > { %1000 = vrcp.f32 %v503_v31 }
 0x118   : > { %v999_v33 = vpop.eup %998 }
 0x119   : > { %v508_v34 = vmul.f32 %v999_v33, %v416_v19 }
 0x11b   : > { %v510_v37 = vmul.f32 %v508_v34, %v489_v26 }
 0x11c   : > { %v1001_v35 = vpop.eup %1000 }
 0x11d   : > { %v509_v36 = vmul.f32 %v1001_v35, %v419_v22 }
 0x11f   : > { %v511_v38 = vmul.f32 %v509_v36, %v492_v30 }
 0x121   : > { %v514_v39 = vpack.c.bf16 %v511_v38, %v510_v37 }
 0x123   : > { %894 = vmatmul.mubr.bf16.vlgmr.msra.gmra.mxu0 %v514_v39 }
 0x1e3   : > { %v613_v41 = vpop.f32.mrf.mxu0 }
 0x1e4   : > { %v620_v42 = vadd.f32 %v613_v41, %v512_v40 }
 0x1e5   : > { %v895_v43 = vpop.f32.mrf.mxu0 }
 0x1e6   : > { %622 = vst.msk [vmem:[#allocation2] sm:$0xff] %vm378_vm2, %v620_v42  ;;  %627 = sbr.rel (%p824_p1) target bundleno = 501 (0x1f5), region = 44 }
 0x1e7   : > { %v616_v45 = vpop.f32.mrf.mxu0 }
 0x1e8   : > { %v621_v46 = vadd.f32 %v616_v45, %v513_v44 }
 0x1e9   : > { %v896_v47 = vpop.f32.mrf.mxu0 }
 0x1ea   : > { %623 = vst.msk [vmem:[#allocation2 + $0x8] sm:$0xff] %vm378_vm2, %v621_v46 }
 0x1eb   : > { %vm638_vm3 = vcmask 519168  }
 0x1ed   : > { %v628_v48 = vld [vmem:[#allocation2] sm:$0xff] }
 0x1ee   : > { %v832_v50 = vpack.c.bf16 %v628_v48, %v628_v48 }
 0x1f0   : > { %639 = vst.msk [vmem:[#allocation3] sm:$0xf] %vm638_vm3, %v832_v50 }
 0x1f1   : > { %v629_v49 = vld [vmem:[#allocation2 + $0x8] sm:$0xff] }
 0x1f2   : > { %v833_v51 = vpack.c.bf16 %v629_v49, %v629_v49 }
 0x1f4   : > { %640 = vst.msk [vmem:[#allocation3 + $0x4] sm:$0xf] %vm638_vm3, %v833_v51 }
 0x1f5 PF: > { %s828_s20 = sshll.u32 %s1086_s19, 2  ;;  %s1107_s22 = smov [#allocation3]  }
 0x1f6   : > { %s649_s21 = sadd.s32 %s828_s20, %s1206_s8  ;;  %s652_s24 = sshll.u32 %s1107_s22, 4  ;;  %s653_s24 = int_to_ptr.vmem [resolvable:$true] %s652_s24 }
 0x1f7   : > { %s829_s25 = sshll.u32 %s649_s21, 6  ;;  %s1002_s12 = scalar_lea.vmem %s653_s24, 128 }
 0x1f8   : > { %s651_s7 = scalar_lea.hbm %s1307_s4, %s829_s25  ;;  %p1003_p2 = scmp.ne.s32.totalorder %s653_s24, %s1002_s12 }
 0x1f9   : > { %p1009_p6 = scmp.lt.s32.totalorder %s653_s24, %s653_s24  ;;  %p1010_p7 = scmp.lt.s32.totalorder %s1002_s12, %s1002_s12 }
 0x1fa   : > { %p1004_p3 = pnand %p1003_p2, %p1187_p5 }
 0x1fb   : > { %p1011_p8 = por %p1010_p7, %p1009_p6 }
 0x1fc   : > { %p1005_p4 = pneg %p1004_p3 }
 0x1fe   : > { %p1012_p9 = pnand %p1011_p8, %p1005_p4 }
 0x200   : > { %1015 = shalt.err (!%p1012_p9)
}
 0x201   : > { %s1016_s19 = scalar_lea.hbm %s651_s7, 128  ;;  %s1020_s29 = scalar_lea.hbm %s1307_s4, 512 }
 0x202   : > { %p1017_p10 = scmp.ne.s32.totalorder %s651_s7, %s1016_s19  ;;  %p1021_p13 = scmp.lt.s32.totalorder %s651_s7, %s1307_s4 }
 0x203   : > { %p1022_p0 = scmp.lt.s32.totalorder %s1020_s29, %s1016_s19 }
 0x204   : > { %p1018_p11 = pnand %p1017_p10, %p1187_p5 }
 0x205   : > { %p1023_p1 = por %p1022_p0, %p1021_p13 }
 0x206   : > { %p1019_p12 = pneg %p1018_p11 }
 0x208   : > { %p1024_p2 = pnand %p1023_p1, %p1019_p12 }
 0x20a   : > { %1027 = shalt.err (!%p1024_p2)
}
 0x20b   : > { %s1108_s5 = smov 64   ;;  %s1109_s6 = smov 4  }
 0x20c   : > { %897 = dma.vmem_to_hbm [thread:$0]  (%p1187_p5), %s653_s24, 128, %s651_s7, [#allocation4], %s1108_s5, %s1108_s5, %s1109_s6  }
 0x20d   : > { %1065 = dma.done.wait (%p1187_p5), [#allocation4], 128  }
 0x20e   : > { %1067 = vsyncadd (%p1187_p5), [#allocation4], 4294967168 }
 0x20f PF: > { %s15_s23 = sadd.s32 1, %s1102_s23   ;;  %s1321_s10 = sld [smem:[#allocation12_spill]] }
 0x210   : > { %p12_p3 = scmp.ge.s32.totalorder %s15_s23, 10   ;;  %s1322_s17 = sld [smem:[#allocation6_spill]] }
 0x211   : > { %s1323_s18 = sld [smem:[#allocation7_spill]]  ;;  %s1328_s15 = smov %s1074_s16 }
 0x212   : > { %s1324_s19 = sld [smem:[#allocation8_spill]]  ;;  %14 = sbr.rel (!%p12_p3) target bundleno = 5 (0x5), region = 81 }
 0x213   : > { %s1325_s20 = sld [smem:[#allocation9_spill]] }
 0x214   : > { %s1326_s21 = sld [smem:[#allocation10_spill]] }
 0x215   : > { %s1327_s22 = sld [smem:[#allocation11_spill]]  ;;  %s1329_s16 = smov %s1321_s10 }
 0x217   :  { %668 = vsyncpa [#allocation4], 1 }
 0x218   :  { %670 = vsyncpa [#allocation4 + $0x1], 1 }

// kernel: tpu_custom_call.1
= control target key start
LH: loop header
LB: loop body
LE: loop exit
PB: predicated region body
PF: predicated region fallthrough
CT: control target
= control target key end

     0   :  { %9 = vsyncpa [#allocation4], 0  ;;  %s1395_s0 = inlined_call_operand.vmem [shape: bf16[2,32,64], index: 0, kind: input, shape index: {}]   ;;  %s1396_s1 = inlined_call_operand.vmem [shape: bf16[2,2,64,128], index: 1, kind: input, shape index: {}]   ;;  %s1397_s2 = inlined_call_operand.vmem [shape: bf16[2,2,64,128], index: 2, kind: input, shape index: {}]   ;;  %s1398_s3 = inlined_call_operand.vmem [shape: bf16[2,256,64], index: 3, kind: input, shape index: {}]   ;;  %s1399_s4 = inlined_call_operand.hbm [shape: bf16[2,32,64], index: 4, kind: output, shape index: {}]  }
   0x1   :  { %11 = vsyncpa [#allocation4 + $0x1], 0  ;;  %s1184_s15 = smov 0   ;;  %s1186_s16 = smov 0  }
   0x2   :  { %s1188_s17 = smov 0   ;;  %s1190_s18 = smov 0  }
   0x3   :  { %s1192_s19 = smov 0   ;;  %s1194_s20 = smov 0  }
   0x4   :  { %s1196_s21 = smov 0   ;;  %s1198_s22 = smov 0  }
   0x5   :  { %s1200_s23 = smov 0   ;;  %s1202_s24 = smov 0  }
   0x6 LB: > { %1411 = sst [smem:[#allocation6_spill]] %s1115_s15  ;;  %s812_s25 = sadd.s32 4294967295, %s1151_s24   ;;  %s1151_s24 = sphi %s1202_s24, %s17_s24   ;;  %s1147_s23 = sphi %s1200_s23, %s1435_s23   ;;  %s1143_s22 = sphi %s1198_s22, %s1434_s22   ;;  %s1139_s21 = sphi %s1196_s21, %s1433_s21   ;;  %s1135_s20 = sphi %s1194_s20, %s1432_s20   ;;  %s1131_s19 = sphi %s1192_s19, %s1431_s19   ;;  %s1127_s18 = sphi %s1190_s18, %s1438_s18   ;;  %s1123_s17 = sphi %s1188_s17, %s1429_s17   ;;  %s1119_s16 = sphi %s1186_s16, %s1437_s16   ;;  %s1115_s15 = sphi %s1184_s15, %s1436_s15  }
   0x7   : > { %1412 = sst [smem:[#allocation7_spill]] %s1123_s17  ;;  %s813_s26 = sadd.s32 4294967294, %s1151_s24  }
   0x8   : > { %1413 = sst [smem:[#allocation8_spill]] %s1139_s21  ;;  %s29_s27 = sadd.s32 1, %s1139_s21 }
   0x9   : > { %1414 = sst [smem:[#allocation9_spill]] %s1143_s22  ;;  %p30_p0 = scmp.ge.s32.totalorder %s29_s27, 2 }
   0xa   : > { %1415 = sst [smem:[#allocation10_spill]] %s1147_s23  ;;  %s32_s28 = sadd.s32 1, %s1143_s22 }
   0xb   : > { %1416 = sst [smem:[#allocation11_spill]] %s1151_s24  ;;  %s36_s29 = sadd.s32 1, %s1147_s23 }
   0xc   : > { %p167_p1 = scmp.ne.s32.totalorder %s1123_s17, %s1119_s16  ;;  %s1440_s27 = smov (%p30_p0, %s29_s27), 0 }
   0xd   : > { %1417 = sst [smem:[#allocation12_spill]] %s1440_s27  ;;  %s1442_s28 = smov (!%p30_p0, %s32_s28), %s1143_s22 }
   0xe   : > { %p168_p2 = scmp.eq.s32.totalorder %s812_s25, 7  ;;  %p173_p3 = scmp.ne.s32.totalorder %s1119_s16, %s1115_s15 }
   0xf   : > { %p34_p4 = scmp.ge.s32.totalorder %s1442_s28, 2  ;;  %p174_p5 = scmp.eq.s32.totalorder %s813_s26, 7 }
  0x10   : > { %p1246_p6 = por %p168_p2, %p167_p1  ;;  %p816_p8 = scmp.ge.s32.totalorder %s1151_s24, 1 }
  0x11   : > { %s1444_s28 = smov (%p34_p4, %s1442_s28), 0  ;;  %s1446_s29 = smov (!%p34_p4, %s36_s29), %s1147_s23 }
  0x12   : > { %1419 = sst [smem:[#allocation13_spill]] %s1444_s28  ;;  %p1253_p7 = por %p174_p5, %p173_p3 }
  0x13   : > { %p38_p9 = scmp.ge.s32.totalorder %s1446_s29, 2  ;;  %p242_p10 = scmp.lt.s32.totalorder %s1151_s24, 9 }
  0x14   : > { %s1420_s5 = scalar_select %p1253_p7, 1, 0 }
  0x15   : > { %s153_s6 = ssub.s32 %s1143_s22, %s1444_s28  ;;  %s1448_s29 = smov (%p38_p9, %s1446_s29), 0 }
  0x16   : > { %1421 = sst [smem:[#allocation14_spill]] %s1420_s5  ;;  %p243_p11 = pnand %p816_p8, %p242_p10 }
  0x17   : > { %1422 = sst [smem:[#allocation15_spill]] %s1448_s29  ;;  %s152_s7 = ssub.s32 %s1147_s23, %s1448_s29 }
  0x18   : > { %s154_s8 = sor.u32 %s153_s6, %s152_s7  ;;  %s157_s9 = sadd.s32 1, %s1123_s17 }
  0x19   : > { %p155_p12 = scmp.eq.s32.totalorder %s154_s8, 0  ;;  %246 = sbr.rel (%p243_p11) target bundleno = 539 (0x21b), region = 36 }
  0x1a   : > { %s1403_s11 = sand.u32 (!%p243_p11), 1, %s1119_s16   ;;  %s1271_s12 = sshll.u32 (!%p243_p11), %s1131_s19, 1 }
  0x1b   : > { %s1267_s10 = scalar_select %p155_p12, %s1123_s17, %s157_s9  }
  0x1c   : > { %s817_s13 = sshll.u32 (!%p243_p11), %s1403_s11, 3  ;;  %p300_p13 = scmp.lt.s32.totalorder (!%p243_p11), %s1135_s20, 1 }
  0x1d   : > { %1423 = sst [smem:[#allocation16_spill]] %s1267_s10  ;;  %p302_p0 = scmp.lt.s32.totalorder (!%p243_p11), %s1271_s12, 3 }
  0x1e   : > { %s301_s14 = scalar_select %p300_p13, %s1135_s20, 1 }
  0x1f   : > { %s303_s25 = scalar_select %p302_p0, %s1271_s12, 3 }
  0x20   : > { %s819_s26 = sshll.u32 %s301_s14, 2  ;;  %p311_p1 = scmp.lt.s32.totalorder %s1127_s18, 1 }
  0x21   : > { %s305_s6 = sadd.s32 %s819_s26, %s303_s25  ;;  %s822_s7 = sshll.u32 %s301_s14, 4 }
  0x22   : > { %s820_s8 = sshll.u32 %s305_s6, 2  ;;  %s827_s9 = sshll.u32 %s1127_s18, 4 }
  0x23   : > { %s1284_s27 = scalar_lea.vmem %s1395_s0, %s820_s8  ;;  %p330_p2 = scmp.lt.s32.totalorder %s827_s9, 31 }
  0x24   : > { %s312_s19 = scalar_select %p311_p1, %s1127_s18, 1 }
  0x25   : > { %s1450_s9 = smov (!%p330_p2, %s827_s9), 31  ;;  %s828_s11 = sshll.u32 %s301_s14, 5 }
  0x26   : > { %s821_s23 = sshll.u32 %s312_s19, 3  ;;  %s333_s21 = sadd.s32 %s828_s11, %s1450_s9 }
  0x27   : > { %s315_s22 = sadd.s32 %s822_s7, %s821_s23  ;;  %s829_s17 = sshll.u32 %s333_s21, 2 }
  0x28   : > { %s823_s10 = sshll.u32 %s315_s22, 2  ;;  %s1298_s8 = scalar_lea.vmem %s1398_s3, %s829_s17 }
  0x29   : > { %s317_s25 = scalar_lea.vmem %s1396_s1, %s823_s10  ;;  %s1293_s24 = scalar_lea.vmem %s1397_s2, %s823_s10 }
  0x2a   : > { %s1300_s19 = scalar_lea.vmem [#allocation3], %s817_s13  ;;  %p830_p3 = scmp.ne.s32.totalorder %s1127_s18, 0 }
  0x2c   : > { %342 = sbr.rel (%p830_p3) target bundleno = 51 (0x33), region = 40 }
  0x31   : > { %vm343_vm0 = vcmask 523264   ;;  %v1153_v0 = vmov 0.0  }
  0x32   : > { %344 = vst.msk [vmem:[#allocation2] sm:$0xff] %vm343_vm0, %v1153_v0  ;;  %345 = vst.msk [vmem:[#allocation2 + $0x8] sm:$0xff] %vm343_vm0, %v1153_v0 }
  0x33 PF: > { %v1018_v1 = vld [vmem:[%s317_s25 + $0x18] sm:$0xff]   ;;  %v1154_v2 = vmov 0.0   ;;  %v1019_v3 = vld [vmem:[%s317_s25 + $0x10] sm:$0xff]   ;;  %vm1155_vm1 = vmmov 0   ;;  %v1020_v4 = vld [vmem:[%s317_s25 + $0x8] sm:$0xff]   ;;  %vm385_vm2 = vcmask 523264  }
  0x34   : > { %882 = vmatprep.subr.bf16.mxu1 %v1154_v2  ;;  %906 = vmatprep.subr.bf16.mxu0 %v1154_v2  ;;  %v1021_v5 = vld [vmem:[%s317_s25] sm:$0xff]   ;;  %v1023_v7 = vld [vmem:[%s1293_s24 + $0x18] sm:$0xff]   ;;  %v1024_v8 = vld [vmem:[%s1293_s24 + $0x10] sm:$0xff]   ;;  %p852_p4 = scmp.ne.s32.totalorder %s1127_s18, 1 }
  0x35   : > { %883 = vmatpush3.bf16.msra.mxu1 %v1018_v1  ;;  %890 = vmatprep.mubr.msk.bf16.mxu1 %vm1155_vm1, %v1154_v2  ;;  %v1022_v6 = vld [vmem:[%s1284_s27] sm:$0xff]   ;;  %v1025_v9 = vld [vmem:[%s1293_s24 + $0x8] sm:$0xff]   ;;  %v1027_v11 = vld [vmem:[%s1298_s8 + $0x38] sm:$0xff]  }
  0x36   : > { %884 = vmatprep.subr.bf16.mxu1 %v1154_v2  ;;  %922 = vmatprep.mubr.msk.bf16.mxu0 %vm1155_vm1, %v1154_v2  ;;  %v1026_v10 = vld [vmem:[%s1293_s24] sm:$0xff]   ;;  %v1028_v12 = vld [vmem:[%s1298_s8 + $0x30] sm:$0xff]   ;;  %v1029_v13 = vld [vmem:[%s1298_s8 + $0x28] sm:$0xff]  }
  0x37   : > { %907 = vmatpush3.bf16.msra.mxu0 %v1027_v11  ;;  %v1030_v14 = vld [vmem:[%s1298_s8 + $0x20] sm:$0xff]   ;;  %v1031_v15 = vld [vmem:[%s1298_s8 + $0x18] sm:$0xff]   ;;  %v1032_v16 = vld [vmem:[%s1298_s8 + $0x10] sm:$0xff]  }
  0x38   : > { %908 = vmatprep.subr.bf16.mxu0 %v1154_v2  ;;  %v1033_v17 = vld [vmem:[%s1298_s8 + $0x8] sm:$0xff]   ;;  %v1034_v18 = vld [vmem:[%s1298_s8] sm:$0xff]  }
  0x39   : > { %885 = vmatpush3.bf16.msra.mxu1 %v1019_v3  ;;  %v519_v40 = vld [vmem:[#allocation2] sm:$0xff]  ;;  %v520_v44 = vld [vmem:[#allocation2 + $0x8] sm:$0xff] }
  0x3a   : > { %886 = vmatprep.subr.bf16.mxu1 %v1154_v2 }
  0x3b   : > { %909 = vmatpush3.bf16.msra.mxu0 %v1028_v12 }
  0x3c   : > { %910 = vmatprep.subr.bf16.mxu0 %v1154_v2 }
  0x3d   : > { %887 = vmatpush3.bf16.msra.mxu1 %v1020_v4 }
  0x3e   : > { %888 = vmatprep.subr.bf16.mxu1 %v1154_v2 }
  0x3f   : > { %911 = vmatpush3.bf16.msra.mxu0 %v1029_v13 }
  0x40   : > { %912 = vmatprep.subr.bf16.mxu0 %v1154_v2 }
  0x41   : > { %889 = vmatpush3.bf16.msra.mxu1 %v1021_v5 }
  0x42   : > { %894 = vmatprep.subr.bf16.mxu1 %v1154_v2 }
  0x43   : > { %913 = vmatpush3.bf16.msra.mxu0 %v1030_v14 }
  0x44   : > { %891 = vmatmul.mubr.msk.bf16.vlgmr.msra.gmra.mxu1 %vm385_vm2, %v1022_v6  ;;  %914 = vmatprep.subr.bf16.mxu0 %v1154_v2 }
  0x45   : > { %895 = vmatpush3.bf16.msra.mxu1 %v1023_v7  ;;  %902 = vmatprep.mubr.msk.bf16.mxu1 %vm1155_vm1, %v1154_v2 }
  0x46   : > { %896 = vmatprep.subr.bf16.mxu1 %v1154_v2 }
  0x47   : > { %915 = vmatpush3.bf16.msra.mxu0 %v1031_v15 }
  0x48   : > { %916 = vmatprep.subr.bf16.mxu0 %v1154_v2 }
  0x49   : > { %897 = vmatpush3.bf16.msra.mxu1 %v1024_v8 }
  0x4a   : > { %898 = vmatprep.subr.bf16.mxu1 %v1154_v2 }
  0x4b   : > { %917 = vmatpush3.bf16.msra.mxu0 %v1032_v16 }
  0x4c   : > { %918 = vmatprep.subr.bf16.mxu0 %v1154_v2 }
  0x4d   : > { %899 = vmatpush3.bf16.msra.mxu1 %v1025_v9 }
  0x4e   : > { %900 = vmatprep.subr.bf16.mxu1 %v1154_v2 }
  0x4f   : > { %919 = vmatpush3.bf16.msra.mxu0 %v1033_v17 }
  0x50   : > { %920 = vmatprep.subr.bf16.mxu0 %v1154_v2 }
  0x51   : > { %901 = vmatpush3.bf16.msra.mxu1 %v1026_v10 }
  0x53   : > { %921 = vmatpush3.bf16.msra.mxu0 %v1034_v18 }
  0x54   : > { %903 = vmatmul.mubr.msk.bf16.vlgmr.msra.gmra.mxu1 %vm385_vm2, %v1022_v6 }
 0x104   : > { %v423_v19 = vpop.f32.mrf.mxu1 }
 0x105   : > { %v842_v20 = vmul.f32 -1.442695, %v423_v19 }
 0x106   : > { %v892_v21 = vpop.f32.mrf.mxu1 }
 0x107   : > { %1035 = vpow2.f32 %v842_v20 }
 0x108   : > { %v426_v22 = vpop.f32.mrf.mxu1 }
 0x109   : > { %v843_v23 = vmul.f32 -1.442695, %v426_v22 }
 0x10a   : > { %v893_v24 = vpop.f32.mrf.mxu1 }
 0x10b   : > { %1037 = vpow2.f32 %v843_v23 }
 0x114   : > { %v1036_v25 = vpop.eup %1035  ;;  %v496_v26 = vpop.f32.mrf.mxu1 }
 0x115   : > { %v509_v27 = vadd.f32 1.0, %v1036_v25 }
 0x116   : > { %v904_v28 = vpop.f32.mrf.mxu1 }
 0x117   : > { %1039 = vrcp.f32 %v509_v27 }
 0x118   : > { %v1038_v29 = vpop.eup %1037  ;;  %v499_v30 = vpop.f32.mrf.mxu1 }
 0x119   : > { %v510_v31 = vadd.f32 1.0, %v1038_v29 }
 0x11a   : > { %v905_v32 = vpop.f32.mrf.mxu1 }
 0x11b   : > { %1041 = vrcp.f32 %v510_v31 }
 0x124   : > { %v1040_v33 = vpop.eup %1039 }
 0x125   : > { %v515_v34 = vmul.f32 %v1040_v33, %v423_v19 }
 0x127   : > { %v517_v37 = vmul.f32 %v515_v34, %v496_v26 }
 0x128   : > { %v1042_v35 = vpop.eup %1041 }
 0x129   : > { %v516_v36 = vmul.f32 %v1042_v35, %v426_v22 }
 0x12b   : > { %v518_v38 = vmul.f32 %v516_v36, %v499_v30 }
 0x12d   : > { %v521_v39 = vpack.c.bf16 %v518_v38, %v517_v37 }
 0x12f   : > { %923 = vmatmul.mubr.bf16.vlgmr.msra.gmra.mxu0 %v521_v39 }
 0x1ef   : > { %v620_v41 = vpop.f32.mrf.mxu0 }
 0x1f0   : > { %v627_v42 = vadd.f32 %v620_v41, %v519_v40 }
 0x1f1   : > { %v924_v43 = vpop.f32.mrf.mxu0 }
 0x1f2   : > { %629 = vst.msk [vmem:[#allocation2] sm:$0xff] %vm385_vm2, %v627_v42  ;;  %634 = sbr.rel (%p852_p4) target bundleno = 513 (0x201), region = 44 }
 0x1f3   : > { %v623_v45 = vpop.f32.mrf.mxu0 }
 0x1f4   : > { %v628_v46 = vadd.f32 %v623_v45, %v520_v44 }
 0x1f5   : > { %v925_v47 = vpop.f32.mrf.mxu0 }
 0x1f6   : > { %630 = vst.msk [vmem:[#allocation2 + $0x8] sm:$0xff] %vm385_vm2, %v628_v46 }
 0x1f7   : > { %vm645_vm3 = vcmask 519168  }
 0x1f9   : > { %v635_v48 = vld [vmem:[#allocation2] sm:$0xff] }
 0x1fa   : > { %v861_v50 = vpack.c.bf16 %v635_v48, %v635_v48 }
 0x1fc   : > { %646 = vst.msk [vmem:[%s1300_s19] sm:$0xf] %vm645_vm3, %v861_v50 }
 0x1fd   : > { %v636_v49 = vld [vmem:[#allocation2 + $0x8] sm:$0xff] }
 0x1fe   : > { %v862_v51 = vpack.c.bf16 %v636_v49, %v636_v49 }
 0x200   : > { %647 = vst.msk [vmem:[%s1300_s19 + $0x4] sm:$0xf] %vm645_vm3, %v862_v51 }
 0x201 PF: > { %s857_s15 = sshll.u32 %s1135_s20, 2  ;;  %s664_s21 = sshll.u32 %s1300_s19, 4  ;;  %s1329_s21 = int_to_ptr.vmem [resolvable:$true] %s664_s21 }
 0x202   : > { %s661_s17 = sadd.s32 %s857_s15, %s1271_s12  ;;  %s1424_s27 = sand.u32 1, %s1119_s16  }
 0x203   : > { %s858_s18 = sshll.u32 %s661_s17, 6  ;;  %s1338_s5 = scalar_lea.sflag [#allocation4], %s1424_s27 }
 0x204   : > { %s1334_s24 = scalar_lea.hbm %s1399_s4, %s858_s18  ;;  %s1043_s10 = scalar_lea.vmem %s1329_s21, 128 }
 0x205   : > { %p1044_p5 = scmp.ne.s32.totalorder %s1329_s21, %s1043_s10  ;;  %s1156_s20 = smov [#allocation3]  }
 0x206   : > { %s1047_s11 = sshll.u32 %s1156_s20, 4  ;;  %s1048_s11 = int_to_ptr.vmem [resolvable:$false] %s1047_s11 }
 0x207   : > { %p1045_p8 = pnand %p1044_p5, %p1246_p6  ;;  %s1049_s12 = scalar_lea.vmem %s1048_s11, 256 }
 0x208   : > { %p1050_p10 = scmp.lt.s32.totalorder %s1329_s21, %s1048_s11  ;;  %p1051_p11 = scmp.lt.s32.totalorder %s1049_s12, %s1043_s10 }
 0x209   : > { %p1046_p9 = pneg %p1045_p8 }
 0x20a   : > { %p1052_p12 = por %p1051_p11, %p1050_p10 }
 0x20c   : > { %p1053_p13 = pnand %p1052_p12, %p1046_p9 }
 0x20e   : > { %1056 = shalt.err (!%p1053_p13)
}
 0x20f   : > { %s1057_s13 = scalar_lea.hbm %s1334_s24, 128  ;;  %s1061_s9 = scalar_lea.hbm %s1399_s4, 512 }
 0x210   : > { %p1058_p0 = scmp.ne.s32.totalorder %s1334_s24, %s1057_s13  ;;  %p1062_p3 = scmp.lt.s32.totalorder %s1334_s24, %s1399_s4 }
 0x211   : > { %p1063_p4 = scmp.lt.s32.totalorder %s1061_s9, %s1057_s13 }
 0x212   : > { %p1059_p1 = pnand %p1058_p0, %p1246_p6 }
 0x213   : > { %p1064_p5 = por %p1063_p4, %p1062_p3 }
 0x214   : > { %p1060_p2 = pneg %p1059_p1 }
 0x216   : > { %p1065_p8 = pnand %p1064_p5, %p1060_p2 }
 0x218   : > { %1068 = shalt.err (!%p1065_p8)
}
 0x219   : > { %s1157_s6 = smov 64   ;;  %s1158_s28 = smov 4  }
 0x21a   : > { %926 = dma.vmem_to_hbm [thread:$0]  (%p1246_p6), %s1329_s21, 128, %s1334_s24, %s1338_s5, %s1157_s6, %s1157_s6, %s1158_s28  }
 0x21b PF: > { %s1425_s29 = sld [smem:[#allocation11_spill]] }
 0x21c   : > { %s1426_s8 = sld [smem:[#allocation6_spill]] }
 0x221   : > { %p932_p9 = scmp.ge.s32.totalorder %s1425_s29, 2 }
 0x222   : > { %s679_s15 = sand.u32 1, %s1426_s8  }
 0x223   : > { %p929_p10 = pnand %p932_p9, %p1253_p7  ;;  %s680_s17 = scalar_lea.sflag [#allocation4], %s679_s15 }
 0x225   : > { %p930_p11 = pneg %p929_p10 }
 0x227   : > { %1110 = dma.done.wait (%p930_p11), %s680_s17, 128  }
 0x228   : > { %1112 = vsyncadd (%p930_p11), %s680_s17, 4294967168  ;;  %s17_s24 = sadd.s32 1, %s1425_s29   ;;  %s1428_s18 = sld [smem:[#allocation7_spill]] }
 0x229   : > { %p14_p12 = scmp.ge.s32.totalorder %s17_s24, 10   ;;  %s1429_s17 = sld [smem:[#allocation16_spill]] }
 0x22a   : > { %s1430_s30 = sld [smem:[#allocation8_spill]]  ;;  %s1436_s15 = smov %s1119_s16 }
 0x22b   : > { %s1431_s19 = sld [smem:[#allocation9_spill]] }
 0x22c   : > { %s1432_s20 = sld [smem:[#allocation10_spill]]  ;;  %16 = sbr.rel (!%p14_p12) target bundleno = 6 (0x6), region = 88 }
 0x22d   : > { %s1433_s21 = sld [smem:[#allocation12_spill]] }
 0x22e   : > { %s1434_s22 = sld [smem:[#allocation13_spill]]  ;;  %s1437_s16 = smov %s1428_s18 }
 0x22f   : > { %s1435_s23 = sld [smem:[#allocation15_spill]] }
 0x230   : > { %s1438_s18 = smov %s1430_s30 }
 0x231   :  { %685 = vsyncpa [#allocation4], 1 }
 0x232   :  { %687 = vsyncpa [#allocation4 + $0x1], 1 }

</bundles_post_ra>
